<compile_context>
chip_gen: v7x
topology: tpu7x:2x2x1
jax: 0.10.0
libtpu: 0.0.40
codegen_flags: <defaults>
</compile_context>

<pallas_src>
import functools

import jax
import jax.numpy as jnp
from jax.experimental import pallas as pl
from jax.experimental.pallas import tpu as pltpu


def focus_kernel(x_ref, sel_ref, o_ref, *, exact_split):
    # x_ref:   (C, hb, 2W)   row i = [x[c, 2i, :] | x[c, 2i+1, :]] on lanes
    # sel_ref: (W, W) bf16   col n <  W/2 picks w = 2n            (even W)
    #                        col n >= W/2 picks w = 2(n-W/2) + 1  (odd  W)
    # o_ref:   (4C, hb, Wh)  torch.cat(dim=1) order: quadrant q = 2*wp + hp
    C, hb, W2 = x_ref.shape
    W = W2 // 2
    Wh = W // 2
    sel = sel_ref[...]

    for hp in range(2):                                   # H parity: even / odd
        slab = x_ref[:, :, hp * W:(hp + 1) * W]           # (C, hb, W)
        slab = slab.reshape(C * hb, W)                    # big-M slab for the MXU
        if exact_split:
            # f32: exact 3-way bf16 split (v == p0 + p1 + p2, each bf16).
            v = slab.astype(jnp.float32)
            p0 = v.astype(jnp.bfloat16)
            r1 = v - p0.astype(jnp.float32)
            p1 = r1.astype(jnp.bfloat16)
            p2 = (r1 - p1.astype(jnp.float32)).astype(jnp.bfloat16)
            res = (jnp.dot(p0, sel, preferred_element_type=jnp.float32)
                   + jnp.dot(p1, sel, preferred_element_type=jnp.float32)
                   + jnp.dot(p2, sel, preferred_element_type=jnp.float32))
        else:
            # bf16: a 0/1 selection of bf16 values is already exact.
            res = jnp.dot(slab, sel, preferred_element_type=jnp.float32)
        res = res.reshape(C, hb, W).astype(o_ref.dtype)   # cols = [even-W | odd-W]
        # Batched stores across all C channels (one slab per quadrant).
        o_ref[hp * C:(hp + 1) * C] = res[:, :, :Wh]           # wp = 0
        o_ref[(2 + hp) * C:(3 + hp) * C] = res[:, :, Wh:]     # wp = 1


def _pick_row_block(B, C, Hh, W, itemsize, target_bytes=4 << 20):
    """Half-height rows per block: the largest divisor of Hh (preferring
    multiples of 8) whose in+out footprint fits the VMEM target, while
    keeping >= 2 total grid steps whenever possible (v7x megacore)."""
    per_row = 4 * C * W * itemsize          # input C*2W + output 4C*(W//2) elems
    max_rows = max(1, target_bytes // per_row)
    if B == 1:                              # ensure >= 2 parallel grid steps
        max_rows = min(max_rows, max(1, Hh // 2))
    if Hh <= max_rows:
        return Hh
    best_any, best_m8 = 1, 0
    for r in range(1, min(Hh, max_rows) + 1):
        if Hh % r == 0:
            best_any = r
            if r % 8 == 0:
                best_m8 = r
    return best_m8 if best_m8 else best_any


def focus_structure(x, *, target_block_bytes=4 << 20):
    """NCHW (B, C, H, W) -> NCHW (B, 4C, H//2, W//2) == FocusStructure.forward."""
    B, C, H, W = x.shape
    assert H % 2 == 0 and W % 2 == 0, "H and W must be even"
    assert x.dtype in (jnp.float32, jnp.bfloat16), "f32 / bf16 supported"
    Hh, Wh = H // 2, W // 2

    # Free metadata reshape: each row of xv = [even-H row | odd-H row] on lanes.
    xv = x.reshape(B, C, Hh, 2 * W)

    # 0/1 lane-compaction matrix (exactly representable in bf16).
    w_idx = jnp.arange(W, dtype=jnp.int32)[:, None]
    n_idx = jnp.arange(W, dtype=jnp.int32)[None, :]
    tgt = jnp.where(n_idx < Wh, 2 * n_idx, 2 * (n_idx - Wh) + 1)
    sel = (w_idx == tgt).astype(jnp.bfloat16)                 # (W, W)

    hb = _pick_row_block(B, C, Hh, W, x.dtype.itemsize, target_block_bytes)
    grid = (B, Hh // hb)

    kernel = functools.partial(focus_kernel,
                               exact_split=(x.dtype == jnp.float32))

    return pl.pallas_call(
        kernel,
        out_shape=jax.ShapeDtypeStruct((B, 4 * C, Hh, Wh), x.dtype),
        grid=grid,
        in_specs=[
            pl.BlockSpec((None, C, hb, 2 * W), lambda b, r: (b, 0, r, 0)),
            pl.BlockSpec((W, W), lambda b, r: (0, 0)),
        ],
        out_specs=pl.BlockSpec((None, 4 * C, hb, Wh), lambda b, r: (b, 0, r, 0)),
        compiler_params=pltpu.CompilerParams(
            dimension_semantics=("parallel", "parallel"),
        ),
    )(xv, sel)


def focus_reference(x):
    # pure-JAX reference of the PyTorch forward (NCHW)
    return jnp.concatenate(
        [x[..., ::2, ::2], x[..., 1::2, ::2], x[..., ::2, 1::2], x[..., 1::2, 1::2]],
        axis=1,
    )


if __name__ == "__main__":
    key = jax.random.PRNGKey(0)
    B, C, H, W = 2, 4, 16, 16
    x = jax.random.normal(key, (B, C, H, W), dtype=jnp.float32)

    out = jax.block_until_ready(focus_structure(x))
    ref = focus_reference(x)

    assert out.shape == (B, 4 * C, H // 2, W // 2), out.shape
    assert out.dtype == x.dtype
    assert jnp.array_equal(out, ref), "mismatch vs reference"

    print("KERNEL_OK")
</pallas_src>

<mosaic_0001>
module attributes {stable_mosaic.version = 11 : i64} {
  func.func @focus_kernel(%arg0: i32, %arg1: i32, %arg2: memref<1x4x8x32xf32, #tpu.memory_space<vmem>>, %arg3: memref<16x16xbf16, #tpu.memory_space<vmem>>, %arg4: memref<1x16x8x8xf32, #tpu.memory_space<vmem>>) attributes {dimension_semantics = [#tpu.dimension_semantics<parallel>, #tpu.dimension_semantics<parallel>], iteration_bounds = array<i64: 2, 1>, scalar_prefetch = 0 : i64, scratch_operands = 0 : i64, tpu.core_type = #tpu.core_type<tc>, window_params = [{transform_indices = @transform_0, window_bounds = array<i64: 1, 4, 8, 32>}, {pipeline_mode = #tpu.pipeline_mode<synchronous>, transform_indices = @transform_1, window_bounds = array<i64: 16, 16>}, {transform_indices = @transform_2, window_bounds = array<i64: 1, 16, 8, 8>}]} {
    %c0 = arith.constant 0 : index
    %c0_0 = arith.constant 0 : index
    %0 = vector.load %arg3[%c0, %c0_0] : memref<16x16xbf16, #tpu.memory_space<vmem>>, vector<16x16xbf16>
    %c0_1 = arith.constant 0 : index
    %c0_2 = arith.constant 0 : index
    %c0_3 = arith.constant 0 : index
    %c0_4 = arith.constant 0 : index
    %1 = vector.load %arg2[%c0_1, %c0_2, %c0_3, %c0_4] : memref<1x4x8x32xf32, #tpu.memory_space<vmem>>, vector<1x4x8x16xf32>
    %2 = vector.shape_cast %1 : vector<1x4x8x16xf32> to vector<4x8x16xf32>
    %3 = vector.shape_cast %2 : vector<4x8x16xf32> to vector<32x16xf32>
    %4 = arith.truncf %3 : vector<32x16xf32> to vector<32x16xbf16>
    %5 = arith.extf %4 : vector<32x16xbf16> to vector<32x16xf32>
    %6 = arith.subf %3, %5 : vector<32x16xf32>
    %7 = arith.truncf %6 : vector<32x16xf32> to vector<32x16xbf16>
    %8 = arith.extf %7 : vector<32x16xbf16> to vector<32x16xf32>
    %9 = arith.subf %6, %8 : vector<32x16xf32>
    %10 = arith.truncf %9 : vector<32x16xf32> to vector<32x16xbf16>
    %cst = arith.constant dense<0.000000e+00> : vector<32x16xf32>
    %11 = tpu.matmul %4, %0, %cst {dimension_numbers = #tpu.dot_dimension_numbers<[1], [0], [0], [1], [0, 0, 1, 1], [], []>} : vector<32x16xbf16>, vector<16x16xbf16>, vector<32x16xf32> -> vector<32x16xf32>
    %cst_5 = arith.constant dense<0.000000e+00> : vector<32x16xf32>
    %12 = tpu.matmul %7, %0, %cst_5 {dimension_numbers = #tpu.dot_dimension_numbers<[1], [0], [0], [1], [0, 0, 1, 1], [], []>} : vector<32x16xbf16>, vector<16x16xbf16>, vector<32x16xf32> -> vector<32x16xf32>
    %13 = arith.addf %11, %12 : vector<32x16xf32>
    %cst_6 = arith.constant dense<0.000000e+00> : vector<32x16xf32>
    %14 = tpu.matmul %10, %0, %cst_6 {dimension_numbers = #tpu.dot_dimension_numbers<[1], [0], [0], [1], [0, 0, 1, 1], [], []>} : vector<32x16xbf16>, vector<16x16xbf16>, vector<32x16xf32> -> vector<32x16xf32>
    %15 = arith.addf %13, %14 : vector<32x16xf32>
    %16 = vector.shape_cast %15 : vector<32x16xf32> to vector<4x8x16xf32>
    %17 = vector.extract_strided_slice %16 {offsets = [0, 0, 0], sizes = [4, 8, 8], strides = [1, 1, 1]} : vector<4x8x16xf32> to vector<4x8x8xf32>
    %c0_7 = arith.constant 0 : index
    %c0_8 = arith.constant 0 : index
    %c0_9 = arith.constant 0 : index
    %c0_10 = arith.constant 0 : index
    %18 = vector.load %arg4[%c0_7, %c0_8, %c0_9, %c0_10] : memref<1x16x8x8xf32, #tpu.memory_space<vmem>>, vector<1x4x8x8xf32>
    %19 = vector.shape_cast %18 : vector<1x4x8x8xf32> to vector<4x8x8xf32>
    %20 = vector.shape_cast %17 : vector<4x8x8xf32> to vector<1x4x8x8xf32>
    tpu.vector_store %arg4[%c0_7, %c0_8, %c0_9, %c0_10], %20 {strides = array<i32>} : memref<1x16x8x8xf32, #tpu.memory_space<vmem>>, vector<1x4x8x8xf32>,
    %21 = vector.extract_strided_slice %16 {offsets = [0, 0, 8], sizes = [4, 8, 8], strides = [1, 1, 1]} : vector<4x8x16xf32> to vector<4x8x8xf32>
    %c0_11 = arith.constant 0 : index
    %c8 = arith.constant 8 : index
    %c0_12 = arith.constant 0 : index
    %c0_13 = arith.constant 0 : index
    %22 = vector.load %arg4[%c0_11, %c8, %c0_12, %c0_13] : memref<1x16x8x8xf32, #tpu.memory_space<vmem>>, vector<1x4x8x8xf32>
    %23 = vector.shape_cast %22 : vector<1x4x8x8xf32> to vector<4x8x8xf32>
    %24 = vector.shape_cast %21 : vector<4x8x8xf32> to vector<1x4x8x8xf32>
    tpu.vector_store %arg4[%c0_11, %c8, %c0_12, %c0_13], %24 {strides = array<i32>} : memref<1x16x8x8xf32, #tpu.memory_space<vmem>>, vector<1x4x8x8xf32>,
    %c0_14 = arith.constant 0 : index
    %c0_15 = arith.constant 0 : index
    %c0_16 = arith.constant 0 : index
    %c16 = arith.constant 16 : index
    %25 = vector.load %arg2[%c0_14, %c0_15, %c0_16, %c16] : memref<1x4x8x32xf32, #tpu.memory_space<vmem>>, vector<1x4x8x16xf32>
    %26 = vector.shape_cast %25 : vector<1x4x8x16xf32> to vector<4x8x16xf32>
    %27 = vector.shape_cast %26 : vector<4x8x16xf32> to vector<32x16xf32>
    %28 = arith.truncf %27 : vector<32x16xf32> to vector<32x16xbf16>
    %29 = arith.extf %28 : vector<32x16xbf16> to vector<32x16xf32>
    %30 = arith.subf %27, %29 : vector<32x16xf32>
    %31 = arith.truncf %30 : vector<32x16xf32> to vector<32x16xbf16>
    %32 = arith.extf %31 : vector<32x16xbf16> to vector<32x16xf32>
    %33 = arith.subf %30, %32 : vector<32x16xf32>
    %34 = arith.truncf %33 : vector<32x16xf32> to vector<32x16xbf16>
    %cst_17 = arith.constant dense<0.000000e+00> : vector<32x16xf32>
    %35 = tpu.matmul %28, %0, %cst_17 {dimension_numbers = #tpu.dot_dimension_numbers<[1], [0], [0], [1], [0, 0, 1, 1], [], []>} : vector<32x16xbf16>, vector<16x16xbf16>, vector<32x16xf32> -> vector<32x16xf32>
    %cst_18 = arith.constant dense<0.000000e+00> : vector<32x16xf32>
    %36 = tpu.matmul %31, %0, %cst_18 {dimension_numbers = #tpu.dot_dimension_numbers<[1], [0], [0], [1], [0, 0, 1, 1], [], []>} : vector<32x16xbf16>, vector<16x16xbf16>, vector<32x16xf32> -> vector<32x16xf32>
    %37 = arith.addf %35, %36 : vector<32x16xf32>
    %cst_19 = arith.constant dense<0.000000e+00> : vector<32x16xf32>
    %38 = tpu.matmul %34, %0, %cst_19 {dimension_numbers = #tpu.dot_dimension_numbers<[1], [0], [0], [1], [0, 0, 1, 1], [], []>} : vector<32x16xbf16>, vector<16x16xbf16>, vector<32x16xf32> -> vector<32x16xf32>
    %39 = arith.addf %37, %38 : vector<32x16xf32>
    %40 = vector.shape_cast %39 : vector<32x16xf32> to vector<4x8x16xf32>
    %41 = vector.extract_strided_slice %40 {offsets = [0, 0, 0], sizes = [4, 8, 8], strides = [1, 1, 1]} : vector<4x8x16xf32> to vector<4x8x8xf32>
    %c0_20 = arith.constant 0 : index
    %c4 = arith.constant 4 : index
    %c0_21 = arith.constant 0 : index
    %c0_22 = arith.constant 0 : index
    %42 = vector.load %arg4[%c0_20, %c4, %c0_21, %c0_22] : memref<1x16x8x8xf32, #tpu.memory_space<vmem>>, vector<1x4x8x8xf32>
    %43 = vector.shape_cast %42 : vector<1x4x8x8xf32> to vector<4x8x8xf32>
    %44 = vector.shape_cast %41 : vector<4x8x8xf32> to vector<1x4x8x8xf32>
    tpu.vector_store %arg4[%c0_20, %c4, %c0_21, %c0_22], %44 {strides = array<i32>} : memref<1x16x8x8xf32, #tpu.memory_space<vmem>>, vector<1x4x8x8xf32>,
    %45 = vector.extract_strided_slice %40 {offsets = [0, 0, 8], sizes = [4, 8, 8], strides = [1, 1, 1]} : vector<4x8x16xf32> to vector<4x8x8xf32>
    %c0_23 = arith.constant 0 : index
    %c12 = arith.constant 12 : index
    %c0_24 = arith.constant 0 : index
    %c0_25 = arith.constant 0 : index
    %46 = vector.load %arg4[%c0_23, %c12, %c0_24, %c0_25] : memref<1x16x8x8xf32, #tpu.memory_space<vmem>>, vector<1x4x8x8xf32>
    %47 = vector.shape_cast %46 : vector<1x4x8x8xf32> to vector<4x8x8xf32>
    %48 = vector.shape_cast %45 : vector<4x8x8xf32> to vector<1x4x8x8xf32>
    tpu.vector_store %arg4[%c0_23, %c12, %c0_24, %c0_25], %48 {strides = array<i32>} : memref<1x16x8x8xf32, #tpu.memory_space<vmem>>, vector<1x4x8x8xf32>,
    return
  }
  func.func @transform_0(%arg0: i32, %arg1: i32) -> (i32, i32, i32, i32) {
    %c0_i32 = arith.constant 0 : i32
    %c0_i32_0 = arith.constant 0 : i32
    %c0_i32_1 = arith.constant 0 : i32
    return %arg0, %c0_i32, %arg1, %c0_i32_0 : i32, i32, i32, i32
  }
  func.func @transform_1(%arg0: i32, %arg1: i32) -> (i32, i32) {
    %c0_i32 = arith.constant 0 : i32
    %c0_i32_0 = arith.constant 0 : i32
    %c0_i32_1 = arith.constant 0 : i32
    return %c0_i32, %c0_i32_0 : i32, i32
  }
  func.func @transform_2(%arg0: i32, %arg1: i32) -> (i32, i32, i32, i32) {
    %c0_i32 = arith.constant 0 : i32
    %c0_i32_0 = arith.constant 0 : i32
    %c0_i32_1 = arith.constant 0 : i32
    return %arg0, %c0_i32, %arg1, %c0_i32_0 : i32, i32, i32, i32
  }
}

</mosaic_0001>

<bundles_post_ra>
// kernel: tpu_custom_call.1
= control target key start
LH: loop header
LB: loop body
LE: loop exit
PB: predicated region body
PF: predicated region fallthrough
CT: control target
= control target key end

     0   :  { %7 = vsyncpa [#allocation3], 0  ;;  %s1305_s0 = inlined_call_operand.hbm [shape: f32[2,4,8,32], index: 0, kind: input, shape index: {}]   ;;  %s1306_s1 = inlined_call_operand.hbm [shape: bf16[16,16], index: 1, kind: input, shape index: {}]   ;;  %s1307_s2 = inlined_call_operand.vmem [shape: f32[2,16,8,8], index: 2, kind: output, shape index: {}]  }
   0x1   :  { %9 = vsyncpa [#allocation3 + $0x1], 0 }
   0x2   :  { %10 = vsyncpa [#allocation5], 0  ;;  %s1095_s9 = smov 0   ;;  %s1097_s10 = smov 0  }
   0x3   :  { %s1099_s11 = smov 0   ;;  %s1101_s12 = smov 0  }
   0x4   :  { %s1103_s13 = smov 0   ;;  %s1105_s14 = smov 0  }
   0x5 LB: > { %s773_s15 = sadd.s32 4294967295, %s1070_s14   ;;  %p50_p0 = scmp.ne.s32.totalorder %s1054_s10, %s1050_s9  ;;  %s1070_s14 = sphi %s1105_s14, %s16_s14   ;;  %s1066_s13 = sphi %s1103_s13, %s1324_s13   ;;  %s1062_s12 = sphi %s1101_s12, %s1323_s12   ;;  %s1058_s11 = sphi %s1099_s11, %s1322_s11   ;;  %s1054_s10 = sphi %s1097_s10, %s1321_s10   ;;  %s1050_s9 = sphi %s1095_s9, %s1320_s9  }
   0x6   : > { %p1125_p1 = scmp.eq.s32.totalorder %s773_s15, 0  ;;  %p775_p2 = scmp.ge.s32.totalorder %s1070_s14, 1 }
   0x7   : > { %p110_p3 = scmp.lt.s32.totalorder %s1070_s14, 3  ;;  %s1072_s19 = smov [#allocation4]  }
   0x8   : > { %s1312_s16 = scalar_select %p1125_p1, 1, 0 }
   0x9   : > { %p1133_p4 = por %p1125_p1, %p50_p0  ;;  %p1137_p5 = pnand %p775_p2, %p110_p3 }
   0xa   : > { %s122_s20 = sshll.u32 %s1072_s19, 4  ;;  %s28_s22 = sadd.s32 1, %s1066_s13  ;;  %s123_s20 = int_to_ptr.vmem [resolvable:$true] %s122_s20 }
   0xb   : > { %s1313_s17 = scalar_select %p1133_p4, 1, 0 }
   0xc   : > { %s1314_s18 = scalar_select %p1137_p5, 1, 0 }
   0xd   : > { %p891_p6 = pneg %p1137_p5  ;;  %s958_s25 = scalar_lea.hbm %s1306_s1, 128 }
   0xe   : > { %p959_p8 = scmp.ne.s32.totalorder %s1306_s1, %s958_s25  ;;  %p965_p12 = scmp.lt.u32.totalorder %s958_s25, %s1306_s1 }
   0xf   : > { %p1145_p7 = pnand %p891_p6, %p1125_p1 }
  0x11   : > { %p960_p9 = pneg %p1145_p7 }
  0x13   : > { %p961_p10 = pnand %p960_p9, %p959_p8 }
  0x15   : > { %p962_p11 = pneg %p961_p10 }
  0x17   : > { %p967_p13 = pnand %p965_p12, %p962_p11 }
  0x19   : > { %970 = shalt.err (!%p967_p13)
}
  0x1a   : > { %s971_s30 = scalar_lea.vmem %s123_s20, 128  ;;  %p979_p6 = scmp.lt.s32.totalorder %s123_s20, %s123_s20 }
  0x1b   : > { %p972_p0 = scmp.ne.s32.totalorder %s123_s20, %s971_s30  ;;  %p980_p1 = scmp.lt.s32.totalorder %s971_s30, %s971_s30 }
  0x1d   : > { %p974_p2 = pnand %p972_p0, %p960_p9  ;;  %p981_p4 = por %p980_p1, %p979_p6 }
  0x1f   : > { %p975_p3 = pneg %p974_p2 }
  0x21   : > { %p982_p5 = pnand %p981_p4, %p975_p3 }
  0x23   : > { %985 = shalt.err (!%p982_p5)
}
  0x24   : > { %s1073_s3 = smov 64   ;;  %s1074_s4 = smov 4  }
  0x25   : > { %894 = dma.hbm_to_vmem [thread:$0]  (!%p1145_p7), %s1306_s1, 128, %s123_s20, [#allocation5], %s1073_s3, %s1073_s3, %s1074_s4  }
  0x26   : > { %p30_p1 = scmp.ge.s32.totalorder %s28_s22, 2  ;;  %s37_s7 = sadd.s32 1, %s1058_s11 }
  0x27   : > { %p44_p4 = scmp.ne.s32.totalorder %s1058_s11, %s1054_s10  ;;  %p45_p5 = scmp.eq.s32.totalorder %s1070_s14, 0 }
  0x28   : > { %s1326_s22 = smov (%p30_p1, %s28_s22), 0  ;;  %p900_p9 = scmp.lt.s32.totalorder %s1070_s14, 2 }
  0x29   : > { %p46_p8 = por %p45_p5, %p44_p4  ;;  %s32_s8 = ssub.s32 %s1066_s13, %s1326_s22 }
  0x2a   : > { %s136_s9 = sand.u32 1, %s1058_s11   ;;  %p35_p10 = scmp.eq.s32.totalorder %s32_s8, 0 }
  0x2b   : > { %s778_s15 = sshll.u32 %s136_s9, 5  ;;  %s813_s19 = sshll.u32 %s1066_s13, 9 }
  0x2c   : > { %s1178_s23 = scalar_select %p35_p10, %s1058_s11, %s37_s7  }
  0x2d   : > { %s1183_s20 = scalar_lea.hbm %s1305_s0, %s813_s19  ;;  %s140_s25 = scalar_lea.vmem [#allocation2], %s778_s15 }
  0x2e   : > { %s148_s26 = sshll.u32 %s140_s25, 4  ;;  %p1185_p7 = pnand %p900_p9, %p46_p8  ;;  %s1189_s26 = int_to_ptr.vmem [resolvable:$true] %s148_s26 }
  0x2f   : > { %s1191_s28 = scalar_lea.sflag [#allocation3], %s136_s9  ;;  %s986_s29 = scalar_lea.hbm %s1183_s20, 512 }
  0x30   : > { %p987_p11 = scmp.ne.s32.totalorder %s1183_s20, %s986_s29  ;;  %p988_p12 = pneg %p1185_p7 }
  0x31   : > { %s991_s4 = scalar_lea.hbm %s1305_s0, 1024  ;;  %p992_p2 = scmp.lt.u32.totalorder %s1183_s20, %s1305_s0 }
  0x32   : > { %p989_p13 = pnand %p988_p12, %p987_p11  ;;  %p993_p3 = scmp.lt.u32.totalorder %s991_s4, %s986_s29 }
  0x33   : > { %p995_p1 = scmp.lt.u32.totalorder %s986_s29, %s1183_s20 }
  0x34   : > { %p990_p0 = pneg %p989_p13  ;;  %p994_p6 = por %p993_p3, %p992_p2 }
  0x36   : > { %p996_p4 = por %p995_p1, %p994_p6 }
  0x38   : > { %p997_p5 = pnand %p996_p4, %p990_p0 }
  0x3a   : > { %1000 = shalt.err (!%p997_p5)
}
  0x3b   : > { %s1001_s7 = scalar_lea.vmem %s1189_s26, 512  ;;  %s1075_s8 = smov [#allocation2]  }
  0x3c   : > { %p1002_p8 = scmp.ne.s32.totalorder %s1189_s26, %s1001_s7  ;;  %s1006_s9 = sshll.u32 %s1075_s8, 4  ;;  %s1007_s9 = int_to_ptr.vmem [resolvable:$false] %s1006_s9 }
  0x3d   : > { %s1008_s15 = scalar_lea.vmem %s1007_s9, 1024  ;;  %p1009_p11 = scmp.lt.s32.totalorder %s1189_s26, %s1007_s9 }
  0x3e   : > { %p1004_p9 = pnand %p1002_p8, %p988_p12  ;;  %p1010_p13 = scmp.lt.s32.totalorder %s1008_s15, %s1001_s7 }
  0x40   : > { %p1005_p10 = pneg %p1004_p9  ;;  %p1011_p2 = por %p1010_p13, %p1009_p11 }
  0x42   : > { %p1012_p3 = pnand %p1011_p2, %p1005_p10 }
  0x44   : > { %1015 = shalt.err (!%p1012_p3)
}
  0x45   : > { %s1076_s19 = smov 128   ;;  %s1077_s21 = smov 8  }
  0x46   : > { %898 = dma.hbm_to_vmem [thread:$0]  (!%p1185_p7), %s1183_s20, 512, %s1189_s26, %s1191_s28, %s1076_s19, %s1076_s19, %s1077_s21  }
  0x47   : > { %p1317_p12 = scmp.ne.s32.totalorder %s1314_s18, 0 }
  0x48   : > { %s162_s24 = sand.u32 (!%p1317_p12), 1, %s1054_s10   ;;  %p1318_p0 = scmp.ne.s32.totalorder (!%p1317_p12), %s1313_s17, 0 }
  0x49   : > { %160 = sbr.rel (%p1317_p12) target bundleno = 571 (0x23b), region = 28  ;;  %s782_s25 = sshll.u32 (!%p1317_p12), %s162_s24, 5 }
  0x4a   : > { %s163_s29 = scalar_lea.sflag (!%p1317_p12), [#allocation3], %s162_s24  ;;  %s166_s30 = scalar_lea.vmem (!%p1317_p12), [#allocation2], %s782_s25 }
  0x50   : > { %1041 = dma.done.wait (%p1318_p0), %s163_s29, 512  }
  0x51   : > { %1043 = vsyncadd (%p1318_p0), %s163_s29, 4294966784  ;;  %p1319_p6 = scmp.ne.s32.totalorder %s1312_s16, 0 }
  0x53   : > { %1045 = dma.done.wait (%p1319_p6), [#allocation5], 128  }
  0x54   : > { %1047 = vsyncadd (%p1319_p6), [#allocation5], 4294967168  ;;  %v433_v0 = vld [vmem:[%s166_s30] sm:$0xff]  ;;  %v434_v1 = vld [vmem:[%s166_s30 + $0x8] sm:$0xff]  ;;  %s1078_s18 = smov 112   ;;  %vm237_vm0 = vcmask 130048  }
  0x55   : > { %v435_v2 = vld [vmem:[%s166_s30 + $0x10] sm:$0xff]  ;;  %v437_v3 = vpack.c.bf16 %v434_v1, %v433_v0  ;;  %v436_v4 = vld [vmem:[%s166_s30 + $0x18] sm:$0xff]  ;;  %v957_v6 = vld [vmem:[#allocation4] sm:$0xff]   ;;  %p194_p7 = scmp.lt.s32.totalorder %s1062_s12, 1  ;;  %vm407_vm1 = vcmask 64512   ;;  %s1079_s27 = smov 120  }
  0x56   : > { %v438_v5 = vpack.c.bf16 %v436_v4, %v435_v2  ;;  %833 = vmatprep.subr.bf16.mxu0 %v957_v6  ;;  %851 = vmatprep.subr.bf16.mxu1 %v957_v6 }
  0x57   : > { %v439_v7 = vunpack.c.l.bf16 %v437_v3  ;;  %v440_v8 = vunpack.c.h.bf16 %v437_v3  ;;  %522 = vrot.lane.b32.xlu1 %v437_v3, %s1078_s18  ;;  %834 = vmatpush3.bf16.msra.mxu0 %v957_v6  ;;  %s1328_s12 = smov (!%p194_p7, %s1062_s12), 1 }
  0x58   : > { %v441_v9 = vunpack.c.l.bf16 %v438_v5  ;;  %v442_v10 = vunpack.c.h.bf16 %v438_v5  ;;  %852 = vmatpush3.bf16.msra.mxu1 %v957_v6  ;;  %839 = vmatprep.subr.bf16.mxu0 %v957_v6  ;;  %s814_s16 = sshll.u32 %s1328_s12, 7 }
  0x59   : > { %v443_v11 = vsub.f32 %v433_v0, %v439_v7  ;;  %v444_v12 = vsub.f32 %v434_v1, %v440_v8  ;;  %857 = vmatprep.subr.bf16.mxu1 %v957_v6  ;;  %s1253_s26 = scalar_lea.vmem %s1307_s2, %s814_s16 }
  0x5a   : > { %v445_v13 = vsub.f32 %v435_v2, %v441_v9  ;;  %v446_v14 = vsub.f32 %v436_v4, %v442_v10 }
  0x5b   : > { %v447_v15 = vpack.c.bf16 %v444_v12, %v443_v11  ;;  %524 = vrot.lane.b32.xlu1 %v438_v5, %s1078_s18 }
  0x5c   : > { %v448_v16 = vpack.c.bf16 %v446_v14, %v445_v13 }
  0x5d   : > { %461 = vrot.lane.b32.xlu0 %v447_v15, %s1078_s18  ;;  %v449_v17 = vunpack.c.l.bf16 %v447_v15  ;;  %v450_v18 = vunpack.c.h.bf16 %v447_v15  ;;  %835 = vmatprep.mubr.msk.bf16.mxu0 %vm237_vm0, %v447_v15 }
  0x5e   : > { %v451_v19 = vunpack.c.l.bf16 %v448_v16  ;;  %v452_v20 = vunpack.c.h.bf16 %v448_v16  ;;  %836 = vmatmul.mubr.msk.bf16.vlgmr.msra.gmra.mrb[0].mxu0 %vm237_vm0, %v448_v16 }
  0x5f   : > { %v453_v21 = vsub.f32 %v443_v11, %v449_v17  ;;  %v454_v22 = vsub.f32 %v444_v12, %v450_v18  ;;  %840 = vmatpush3.bf16.msra.mxu0 %v957_v6  ;;  %841 = vmatprep.mubr.msk.bf16.mxu0 %vm237_vm0, %v437_v3 }
  0x60   : > { %v455_v23 = vsub.f32 %v445_v13, %v451_v19  ;;  %v456_v24 = vsub.f32 %v446_v14, %v452_v20  ;;  %845 = vmatprep.subr.bf16.mxu0 %v957_v6 }
  0x61   : > { %463 = vrot.lane.b32.xlu0 %v448_v16, %s1078_s18  ;;  %v457_v25 = vpack.c.bf16 %v454_v22, %v453_v21 }
  0x62   : > { %v458_v26 = vpack.c.bf16 %v456_v24, %v455_v23 }
  0x64   : > { %585 = vrot.lane.b32.xlu1 %v458_v26, %s1078_s18 }
  0x65   : > { %583 = vrot.lane.b32.xlu0 %v457_v25, %s1078_s18 }
  0x6a   : > { %842 = vmatmul.mubr.msk.bf16.vlgmr.msra.gmra.mrb[0].mxu0 %vm237_vm0, %v438_v5 }
  0x6b   : > { %846 = vmatpush3.bf16.msra.mxu0 %v957_v6  ;;  %847 = vmatprep.mubr.msk.bf16.mxu0 %vm237_vm0, %v457_v25 }
  0x76   : > { %848 = vmatmul.mubr.msk.bf16.vlgmr.msra.gmra.mrb[0].mxu0 %vm237_vm0, %v458_v26 }
  0xc9   : > { %v523_v28 = vpop.permute.xlu1 %522 }
  0xcd   : > { %v525_v30 = vpop.permute.xlu1 %524 }
  0xcf   : > { %v462_v27 = vpop.permute.xlu0 %461 }
  0xd0   : > { %853 = vmatprep.mubr.msk.bf16.mxu1 %vm237_vm0, %v462_v27 }
  0xd3   : > { %v464_v29 = vpop.permute.xlu0 %463 }
  0xd4   : > { %854 = vmatmul.mubr.msk.bf16.vlgmr.msra.gmra.mrb[0].mxu1 %vm237_vm0, %v464_v29 }
  0xd5   : > { %858 = vmatpush3.bf16.msra.mxu1 %v957_v6  ;;  %859 = vmatprep.mubr.msk.bf16.mxu1 %vm237_vm0, %v523_v28 }
  0xd6   : > { %863 = vmatprep.subr.bf16.mxu1 %v957_v6  ;;  %v586_v32 = vpop.permute.xlu1 %585 }
  0xd7   : > { %v584_v31 = vpop.permute.xlu0 %583 }
  0xe0   : > { %860 = vmatmul.mubr.msk.bf16.vlgmr.msra.gmra.mrb[0].mxu1 %vm237_vm0, %v525_v30 }
  0xe1   : > { %864 = vmatpush3.bf16.msra.mxu1 %v957_v6  ;;  %865 = vmatprep.mubr.msk.bf16.mxu1 %vm237_vm0, %v584_v31 }
  0xec   : > { %866 = vmatmul.mubr.msk.bf16.vlgmr.msra.gmra.mrb[0].mxu1 %vm237_vm0, %v586_v32 }
 0x149   : > { %v849_v33 = vpop.f32.mrb[0].mxu0 }
 0x14a   : > { %410 = vst.msk [vmem:[%s1253_s26 + $0x10] sm:$0xff] %vm407_vm1, %v849_v33  ;;  %v388_v34 = vpop.f32.mrb[1].mxu0  ;;  %420 = vrot.lane.b32.xlu0 %v849_v33, %s1079_s27 }
 0x14b   : > { %408 = vst.msk [vmem:[%s1253_s26] sm:$0xff] %vm407_vm1, %v388_v34  ;;  %v850_v35 = vpop.f32.mrb[2].mxu0 }
 0x14c   : > { %411 = vst.msk [vmem:[%s1253_s26 + $0x18] sm:$0xff] %vm407_vm1, %v850_v35  ;;  %422 = vrot.lane.b32.xlu1 %v850_v35, %s1079_s27  ;;  %v391_v36 = vpop.f32.mrb[3].mxu0 }
 0x14d   : > { %409 = vst.msk [vmem:[%s1253_s26 + $0x8] sm:$0xff] %vm407_vm1, %v391_v36 }
 0x14e   : > { %416 = vrot.lane.b32.xlu0 %v388_v34, %s1079_s27 }
 0x150   : > { %418 = vrot.lane.b32.xlu1 %v391_v36, %s1079_s27 }
 0x1bc   : > { %v421_v37 = vpop.permute.xlu0 %420 }
 0x1bd   : > { %795 = vst.msk [vmem:[%s1253_s26 + $0x50] sm:$0xff] %vm407_vm1, %v421_v37 }
 0x1be   : > { %v423_v38 = vpop.permute.xlu1 %422 }
 0x1bf   : > { %v867_v39 = vpop.f32.mrb[0].mxu1  ;;  %796 = vst.msk [vmem:[%s1253_s26 + $0x58] sm:$0xff] %vm407_vm1, %v423_v38 }
 0x1c0   : > { %805 = vst.msk [vmem:[%s1253_s26 + $0x30] sm:$0xff] %vm407_vm1, %v867_v39  ;;  %v627_v40 = vpop.f32.mrb[1].mxu1  ;;  %v417_v41 = vpop.permute.xlu0 %416 }
 0x1c1   : > { %803 = vst.msk [vmem:[%s1253_s26 + $0x20] sm:$0xff] %vm407_vm1, %v627_v40  ;;  %v868_v42 = vpop.f32.mrb[2].mxu1  ;;  %655 = vrot.lane.b32.xlu0 %v627_v40, %s1079_s27  ;;  %793 = vst.msk [vmem:[%s1253_s26 + $0x40] sm:$0xff] %vm407_vm1, %v417_v41 }
 0x1c2   : > { %806 = vst.msk [vmem:[%s1253_s26 + $0x38] sm:$0xff] %vm407_vm1, %v868_v42  ;;  %v630_v43 = vpop.f32.mrb[3].mxu1  ;;  %v419_v44 = vpop.permute.xlu1 %418 }
 0x1c3   : > { %804 = vst.msk [vmem:[%s1253_s26 + $0x28] sm:$0xff] %vm407_vm1, %v630_v43  ;;  %657 = vrot.lane.b32.xlu1 %v630_v43, %s1079_s27  ;;  %794 = vst.msk [vmem:[%s1253_s26 + $0x48] sm:$0xff] %vm407_vm1, %v419_v44 }
 0x1c5   : > { %659 = vrot.lane.b32.xlu0 %v867_v39, %s1079_s27 }
 0x1c7   : > { %661 = vrot.lane.b32.xlu1 %v868_v42, %s1079_s27 }
 0x233   : > { %v656_v45 = vpop.permute.xlu0 %655 }
 0x234   : > { %807 = vst.msk [vmem:[%s1253_s26 + $0x60] sm:$0xff] %vm407_vm1, %v656_v45 }
 0x235   : > { %v658_v46 = vpop.permute.xlu1 %657 }
 0x236   : > { %808 = vst.msk [vmem:[%s1253_s26 + $0x68] sm:$0xff] %vm407_vm1, %v658_v46 }
 0x237   : > { %v660_v47 = vpop.permute.xlu0 %659 }
 0x238   : > { %809 = vst.msk [vmem:[%s1253_s26 + $0x70] sm:$0xff] %vm407_vm1, %v660_v47 }
 0x239   : > { %v662_v48 = vpop.permute.xlu1 %661 }
 0x23a   : > { %810 = vst.msk [vmem:[%s1253_s26 + $0x78] sm:$0xff] %vm407_vm1, %v662_v48 }
 0x23b PF: > { %s16_s14 = sadd.s32 1, %s1070_s14   ;;  %s1320_s9 = smov %s1054_s10 }
 0x23c   : > { %p13_p1 = scmp.ge.s32.totalorder %s16_s14, 4   ;;  %s1321_s10 = smov %s1058_s11 }
 0x23d   : > { %s1322_s11 = smov %s1178_s23  ;;  %s1323_s12 = smov %s1066_s13 }
 0x23e   : > { %s1324_s13 = smov %s1326_s22  ;;  %15 = sbr.rel (!%p13_p1) target bundleno = 5 (0x5), region = 75 }
 0x245   :  { %699 = vsyncpa [#allocation3], 1 }
 0x246   :  { %701 = vsyncpa [#allocation3 + $0x1], 1 }
 0x247   :  { %702 = vsyncpa [#allocation5], 1 }

</bundles_post_ra>
